<compile_context>
chip_gen: v7x
topology: tpu7x:2x2x1
jax: 0.10.0
libtpu: 0.0.40
codegen_flags: <defaults>
</compile_context>

<pallas_src>
import functools

import jax
import jax.numpy as jnp
from jax.experimental import pallas as pl
from jax.experimental.pallas import tpu as pltpu

NUM_CLASSES = 3      # neo / non / bg prediction channels
MASK_CHANNELS = 4    # channel 0 = ignore, channels 1..3 = targets
LANES = 128
MAX_ROW_TILE = 1024  # rows of 128 lanes; logits block = 3*1024*128*4B = 1.5 MiB


def _iou_sums_kernel(logits_ref, mask_ref, out_ref):
    """Accumulate per-lane partial sums into out_ref (1, 16, 128).

    Row layout of out_ref (per batch element, rows 9..15 unused/zero):
      rows 0..2 : tp_c   = sum(onehot_c * target_c * keep)
      rows 3..5 : pred_c = sum(onehot_c * keep)
      rows 6..8 : targ_c = sum(target_c * keep)
    """
    t = pl.program_id(1)

    @pl.when(t == 0)
    def _init():
        out_ref[...] = jnp.zeros_like(out_ref)

    # (row_tile, 128) slabs -> full [8,128] vregs when row_tile >= 8.
    l0 = logits_ref[0, 0]
    l1 = logits_ref[0, 1]
    l2 = logits_ref[0, 2]

    keep = 1.0 - mask_ref[0, 0].astype(jnp.float32)
    tg = (mask_ref[0, 1].astype(jnp.float32),
          mask_ref[0, 2].astype(jnp.float32),
          mask_ref[0, 3].astype(jnp.float32))

    # First-occurrence argmax over the 3 classes (matches jnp/torch.argmax).
    best01 = jnp.maximum(l0, l1)
    is2 = l2 > best01
    is1 = jnp.logical_and(l1 > l0, jnp.logical_not(is2))
    is0 = jnp.logical_not(jnp.logical_or(is1, is2))
    # One-hot fused with the keep mask: oh_c == onehot_c * keep.
    oh = (jnp.where(is0, keep, 0.0),
          jnp.where(is1, keep, 0.0),
          jnp.where(is2, keep, 0.0))

    for c in range(NUM_CLASSES):
        tp_c = jnp.sum(oh[c] * tg[c], axis=0, keepdims=True)    # (1, 128)
        pr_c = jnp.sum(oh[c], axis=0, keepdims=True)             # (1, 128)
        tg_c = jnp.sum(tg[c] * keep, axis=0, keepdims=True)      # (1, 128)
        out_ref[0, c:c + 1, :] += tp_c
        out_ref[0, 3 + c:4 + c, :] += pr_c
        out_ref[0, 6 + c:7 + c, :] += tg_c


def _pick_row_tiling(rows):
    """Pick (row_tile, padded_rows) for the (rows, 128) pixel layout."""
    if rows <= MAX_ROW_TILE:
        return rows, rows                      # single block == full dim
    for rt in range(MAX_ROW_TILE, 0, -8):      # multiples of 8 only
        if rows % rt == 0:
            return rt, rows
    padded = ((rows + MAX_ROW_TILE - 1) // MAX_ROW_TILE) * MAX_ROW_TILE
    return MAX_ROW_TILE, padded


@functools.partial(jax.jit, static_argnames=("smooth",))
def iou_forward(y_pr, mask, smooth=1.0):
    """Equivalent of IoU().forward(y_pr, mask).

    y_pr: (N, 3, H, W) logits (NCHW, like PyTorch)
    mask: (N, 4, H, W), channel 0 = ignore, channels 1..3 = targets
    """
    N, C, H, W = y_pr.shape
    assert C == NUM_CLASSES
    assert mask.shape == (N, MASK_CHANNELS, H, W)

    P = H * W
    rows = (P + LANES - 1) // LANES
    row_tile, rows_pad = _pick_row_tiling(rows)
    P_pad = rows_pad * LANES

    # Free, layout-preserving reshapes (no transpose, no channel slicing).
    logits = y_pr.reshape(N, NUM_CLASSES, P)
    mask_f = mask.reshape(N, MASK_CHANNELS, P)

    if P_pad != P:  # rare path: pixel count not a multiple of 128
        pad = P_pad - P
        logits = jnp.pad(logits, ((0, 0), (0, 0), (0, pad)))
        mask_f = jnp.pad(mask_f, ((0, 0), (0, 0), (0, pad)))
        # Padded pixels are "ignored": ignore=1 -> keep=0 -> zero contribution.
        mask_f = mask_f.at[:, 0, P:].set(1.0)

    logits = logits.reshape(N, NUM_CLASSES, rows_pad, LANES)
    mask_f = mask_f.reshape(N, MASK_CHANNELS, rows_pad, LANES)
    num_row_tiles = rows_pad // row_tile

    parts = pl.pallas_call(
        _iou_sums_kernel,
        out_shape=jax.ShapeDtypeStruct((N, 16, LANES), jnp.float32),
        grid=(N, num_row_tiles),
        in_specs=[
            pl.BlockSpec((1, NUM_CLASSES, row_tile, LANES),
                         lambda n, t: (n, 0, t, 0)),
            pl.BlockSpec((1, MASK_CHANNELS, row_tile, LANES),
                         lambda n, t: (n, 0, t, 0)),
        ],
        out_specs=pl.BlockSpec((1, 16, LANES), lambda n, t: (n, 0, 0)),
        compiler_params=pltpu.CompilerParams(
            dimension_semantics=("parallel", "arbitrary"),
            vmem_limit_bytes=32 * 1024 * 1024,
        ),
    )(logits, mask_f)

    # Tiny final reduce (16 x 128 per batch) done once in plain JAX.
    sums = jnp.sum(parts, axis=(0, 2))          # (16,)
    tp = sums[0:3]
    fp = sums[3:6] - tp
    fn = sums[6:9] - tp
    iou = (tp + smooth) / (tp + fp + fn + smooth)
    return jnp.mean(iou)


def iou_reference(y_pr, mask, smooth=1.0):
    """Pure-JAX reference mirroring the PyTorch code path (ignore is not None)."""
    ignore_mask = mask[:, 0:1]
    neo_mask = mask[:, 1:4]
    idx = jnp.argmax(y_pr, axis=1, keepdims=True)
    onehot = jnp.concatenate([(idx == 0), (idx == 1), (idx == 2)],
                             axis=1).astype(jnp.float32)
    keep = 1.0 - ignore_mask
    tp = jnp.sum(onehot * neo_mask * keep, axis=(0, 2, 3))
    fp = jnp.sum(onehot * keep, axis=(0, 2, 3)) - tp
    fn = jnp.sum(neo_mask * keep, axis=(0, 2, 3)) - tp
    return jnp.mean((tp + smooth) / (tp + fp + fn + smooth))


if __name__ == "__main__":
    key = jax.random.PRNGKey(0)
    k1, k2, k3, k4 = jax.random.split(key, 4)

    # Case 1: pixel count is a multiple of 128 (fast path, no padding).
    N, H, W = 2, 16, 16
    y_pr = jax.random.normal(k1, (N, NUM_CLASSES, H, W), dtype=jnp.float32)
    cls = jax.random.randint(k2, (N, H, W), 0, 4)
    mask = jax.nn.one_hot(cls, 4, axis=1, dtype=jnp.float32)  # (N, 4, H, W)

    score = iou_forward(y_pr, mask)
    jax.block_until_ready(score)
    ref = iou_reference(y_pr, mask)
    assert jnp.allclose(score, ref, rtol=1e-5, atol=1e-5), (score, ref)

    # Case 2: pixel count NOT a multiple of 128 (exercises the pad-as-ignore path).
    H2, W2 = 20, 20
    y_pr2 = jax.random.normal(k3, (N, NUM_CLASSES, H2, W2), dtype=jnp.float32)
    cls2 = jax.random.randint(k4, (N, H2, W2), 0, 4)
    mask2 = jax.nn.one_hot(cls2, 4, axis=1, dtype=jnp.float32)

    score2 = iou_forward(y_pr2, mask2)
    jax.block_until_ready(score2)
    ref2 = iou_reference(y_pr2, mask2)
    assert jnp.allclose(score2, ref2, rtol=1e-5, atol=1e-5), (score2, ref2)

    print("KERNEL_OK")
</pallas_src>

<mosaic_0001>
module attributes {stable_mosaic.version = 11 : i64} {
  func.func @_iou_sums_kernel(%arg0: i32, %arg1: i32, %arg2: memref<1x3x2x128xf32, #tpu.memory_space<vmem>>, %arg3: memref<1x4x2x128xf32, #tpu.memory_space<vmem>>, %arg4: memref<1x16x128xf32, #tpu.memory_space<vmem>>) attributes {dimension_semantics = [#tpu.dimension_semantics<parallel>, #tpu.dimension_semantics<arbitrary>], iteration_bounds = array<i64: 2, 1>, scalar_prefetch = 0 : i64, scratch_operands = 0 : i64, tpu.core_type = #tpu.core_type<tc>, window_params = [{transform_indices = @transform_0, window_bounds = array<i64: 1, 3, 2, 128>}, {transform_indices = @transform_1, window_bounds = array<i64: 1, 4, 2, 128>}, {transform_indices = @transform_2, window_bounds = array<i64: 1, 16, 128>}]} {
    %c0_i32 = arith.constant 0 : i32
    %0 = arith.cmpi eq, %arg1, %c0_i32 : i32
    %1 = arith.extui %0 : i1 to i32
    %c0_i32_0 = arith.constant 0 : i32
    %2 = arith.cmpi ne, %1, %c0_i32_0 : i32
    scf.if %2 {
      %cst_88 = arith.constant 0.000000e+00 : f32
      %110 = vector.broadcast %cst_88 : f32 to vector<1x16x128xf32>
      %c0_89 = arith.constant 0 : index
      %c0_90 = arith.constant 0 : index
      %c0_91 = arith.constant 0 : index
      %111 = vector.load %arg4[%c0_89, %c0_90, %c0_91] : memref<1x16x128xf32, #tpu.memory_space<vmem>>, vector<1x16x128xf32>
      tpu.vector_store %arg4[%c0_89, %c0_90, %c0_91], %110 {strides = array<i32>} : memref<1x16x128xf32, #tpu.memory_space<vmem>>, vector<1x16x128xf32>,
    } else {
    }
    %c0 = arith.constant 0 : index
    %c0_1 = arith.constant 0 : index
    %c0_2 = arith.constant 0 : index
    %c0_3 = arith.constant 0 : index
    %3 = vector.load %arg2[%c0, %c0_1, %c0_2, %c0_3] : memref<1x3x2x128xf32, #tpu.memory_space<vmem>>, vector<1x1x2x128xf32>
    %4 = vector.shape_cast %3 : vector<1x1x2x128xf32> to vector<2x128xf32>
    %c0_4 = arith.constant 0 : index
    %c1 = arith.constant 1 : index
    %c0_5 = arith.constant 0 : index
    %c0_6 = arith.constant 0 : index
    %5 = vector.load %arg2[%c0_4, %c1, %c0_5, %c0_6] : memref<1x3x2x128xf32, #tpu.memory_space<vmem>>, vector<1x1x2x128xf32>
    %6 = vector.shape_cast %5 : vector<1x1x2x128xf32> to vector<2x128xf32>
    %c0_7 = arith.constant 0 : index
    %c2 = arith.constant 2 : index
    %c0_8 = arith.constant 0 : index
    %c0_9 = arith.constant 0 : index
    %7 = vector.load %arg2[%c0_7, %c2, %c0_8, %c0_9] : memref<1x3x2x128xf32, #tpu.memory_space<vmem>>, vector<1x1x2x128xf32>
    %8 = vector.shape_cast %7 : vector<1x1x2x128xf32> to vector<2x128xf32>
    %c0_10 = arith.constant 0 : index
    %c0_11 = arith.constant 0 : index
    %c0_12 = arith.constant 0 : index
    %c0_13 = arith.constant 0 : index
    %9 = vector.load %arg3[%c0_10, %c0_11, %c0_12, %c0_13] : memref<1x4x2x128xf32, #tpu.memory_space<vmem>>, vector<1x1x2x128xf32>
    %10 = vector.shape_cast %9 : vector<1x1x2x128xf32> to vector<2x128xf32>
    %cst = arith.constant 1.000000e+00 : f32
    %11 = vector.broadcast %cst : f32 to vector<2x128xf32>
    %12 = arith.subf %11, %10 : vector<2x128xf32>
    %c0_14 = arith.constant 0 : index
    %c1_15 = arith.constant 1 : index
    %c0_16 = arith.constant 0 : index
    %c0_17 = arith.constant 0 : index
    %13 = vector.load %arg3[%c0_14, %c1_15, %c0_16, %c0_17] : memref<1x4x2x128xf32, #tpu.memory_space<vmem>>, vector<1x1x2x128xf32>
    %14 = vector.shape_cast %13 : vector<1x1x2x128xf32> to vector<2x128xf32>
    %c0_18 = arith.constant 0 : index
    %c2_19 = arith.constant 2 : index
    %c0_20 = arith.constant 0 : index
    %c0_21 = arith.constant 0 : index
    %15 = vector.load %arg3[%c0_18, %c2_19, %c0_20, %c0_21] : memref<1x4x2x128xf32, #tpu.memory_space<vmem>>, vector<1x1x2x128xf32>
    %16 = vector.shape_cast %15 : vector<1x1x2x128xf32> to vector<2x128xf32>
    %c0_22 = arith.constant 0 : index
    %c3 = arith.constant 3 : index
    %c0_23 = arith.constant 0 : index
    %c0_24 = arith.constant 0 : index
    %17 = vector.load %arg3[%c0_22, %c3, %c0_23, %c0_24] : memref<1x4x2x128xf32, #tpu.memory_space<vmem>>, vector<1x1x2x128xf32>
    %18 = vector.shape_cast %17 : vector<1x1x2x128xf32> to vector<2x128xf32>
    %19 = arith.maximumf %4, %6 : vector<2x128xf32>
    %20 = arith.cmpf ogt, %8, %19 : vector<2x128xf32>
    %21 = arith.cmpf ogt, %6, %4 : vector<2x128xf32>
    %cst_25 = arith.constant dense<true> : vector<2x128xi1>
    %22 = arith.xori %20, %cst_25 : vector<2x128xi1>
    %23 = arith.andi %21, %22 : vector<2x128xi1>
    %24 = arith.ori %23, %20 : vector<2x128xi1>
    %cst_26 = arith.constant dense<true> : vector<2x128xi1>
    %25 = arith.xori %24, %cst_26 : vector<2x128xi1>
    %cst_27 = arith.constant 0.000000e+00 : f32
    %26 = vector.broadcast %cst_27 : f32 to vector<2x128xf32>
    %27 = arith.select %25, %12, %26 : vector<2x128xi1>, vector<2x128xf32>
    %cst_28 = arith.constant 0.000000e+00 : f32
    %28 = vector.broadcast %cst_28 : f32 to vector<2x128xf32>
    %29 = arith.select %23, %12, %28 : vector<2x128xi1>, vector<2x128xf32>
    %cst_29 = arith.constant 0.000000e+00 : f32
    %30 = vector.broadcast %cst_29 : f32 to vector<2x128xf32>
    %31 = arith.select %20, %12, %30 : vector<2x128xi1>, vector<2x128xf32>
    %32 = arith.mulf %27, %14 : vector<2x128xf32>
    %cst_30 = arith.constant dense<0.000000e+00> : vector<128xf32>
    %33 = vector.multi_reduction <add>, %32, %cst_30 [0] : vector<2x128xf32> to vector<128xf32>
    %34 = vector.shape_cast %33 : vector<128xf32> to vector<1x128xf32>
    %cst_31 = arith.constant dense<0.000000e+00> : vector<128xf32>
    %35 = vector.multi_reduction <add>, %27, %cst_31 [0] : vector<2x128xf32> to vector<128xf32>
    %36 = vector.shape_cast %35 : vector<128xf32> to vector<1x128xf32>
    %37 = arith.mulf %14, %12 : vector<2x128xf32>
    %cst_32 = arith.constant dense<0.000000e+00> : vector<128xf32>
    %38 = vector.multi_reduction <add>, %37, %cst_32 [0] : vector<2x128xf32> to vector<128xf32>
    %39 = vector.shape_cast %38 : vector<128xf32> to vector<1x128xf32>
    %c0_33 = arith.constant 0 : index
    %c0_34 = arith.constant 0 : index
    %c0_35 = arith.constant 0 : index
    %40 = vector.load %arg4[%c0_33, %c0_34, %c0_35] : memref<1x16x128xf32, #tpu.memory_space<vmem>>, vector<1x1x128xf32>
    %41 = vector.shape_cast %40 : vector<1x1x128xf32> to vector<1x128xf32>
    %42 = arith.addf %41, %34 : vector<1x128xf32>
    %c0_36 = arith.constant 0 : index
    %c0_37 = arith.constant 0 : index
    %c0_38 = arith.constant 0 : index
    %43 = vector.load %arg4[%c0_36, %c0_37, %c0_38] : memref<1x16x128xf32, #tpu.memory_space<vmem>>, vector<1x1x128xf32>
    %44 = vector.shape_cast %43 : vector<1x1x128xf32> to vector<1x128xf32>
    %45 = vector.shape_cast %42 : vector<1x128xf32> to vector<1x1x128xf32>
    tpu.vector_store %arg4[%c0_36, %c0_37, %c0_38], %45 {strides = array<i32>} : memref<1x16x128xf32, #tpu.memory_space<vmem>>, vector<1x1x128xf32>,
    %c0_39 = arith.constant 0 : index
    %c3_40 = arith.constant 3 : index
    %c0_41 = arith.constant 0 : index
    %46 = vector.load %arg4[%c0_39, %c3_40, %c0_41] : memref<1x16x128xf32, #tpu.memory_space<vmem>>, vector<1x1x128xf32>
    %47 = vector.shape_cast %46 : vector<1x1x128xf32> to vector<1x128xf32>
    %48 = arith.addf %47, %36 : vector<1x128xf32>
    %c0_42 = arith.constant 0 : index
    %c3_43 = arith.constant 3 : index
    %c0_44 = arith.constant 0 : index
    %49 = vector.load %arg4[%c0_42, %c3_43, %c0_44] : memref<1x16x128xf32, #tpu.memory_space<vmem>>, vector<1x1x128xf32>
    %50 = vector.shape_cast %49 : vector<1x1x128xf32> to vector<1x128xf32>
    %51 = vector.shape_cast %48 : vector<1x128xf32> to vector<1x1x128xf32>
    tpu.vector_store %arg4[%c0_42, %c3_43, %c0_44], %51 {strides = array<i32>} : memref<1x16x128xf32, #tpu.memory_space<vmem>>, vector<1x1x128xf32>,
    %c0_45 = arith.constant 0 : index
    %c6 = arith.constant 6 : index
    %c0_46 = arith.constant 0 : index
    %52 = vector.load %arg4[%c0_45, %c6, %c0_46] : memref<1x16x128xf32, #tpu.memory_space<vmem>>, vector<1x1x128xf32>
    %53 = vector.shape_cast %52 : vector<1x1x128xf32> to vector<1x128xf32>
    %54 = arith.addf %53, %39 : vector<1x128xf32>
    %c0_47 = arith.constant 0 : index
    %c6_48 = arith.constant 6 : index
    %c0_49 = arith.constant 0 : index
    %55 = vector.load %arg4[%c0_47, %c6_48, %c0_49] : memref<1x16x128xf32, #tpu.memory_space<vmem>>, vector<1x1x128xf32>
    %56 = vector.shape_cast %55 : vector<1x1x128xf32> to vector<1x128xf32>
    %57 = vector.shape_cast %54 : vector<1x128xf32> to vector<1x1x128xf32>
    tpu.vector_store %arg4[%c0_47, %c6_48, %c0_49], %57 {strides = array<i32>} : memref<1x16x128xf32, #tpu.memory_space<vmem>>, vector<1x1x128xf32>,
    %58 = arith.mulf %29, %16 : vector<2x128xf32>
    %cst_50 = arith.constant dense<0.000000e+00> : vector<128xf32>
    %59 = vector.multi_reduction <add>, %58, %cst_50 [0] : vector<2x128xf32> to vector<128xf32>
    %60 = vector.shape_cast %59 : vector<128xf32> to vector<1x128xf32>
    %cst_51 = arith.constant dense<0.000000e+00> : vector<128xf32>
    %61 = vector.multi_reduction <add>, %29, %cst_51 [0] : vector<2x128xf32> to vector<128xf32>
    %62 = vector.shape_cast %61 : vector<128xf32> to vector<1x128xf32>
    %63 = arith.mulf %16, %12 : vector<2x128xf32>
    %cst_52 = arith.constant dense<0.000000e+00> : vector<128xf32>
    %64 = vector.multi_reduction <add>, %63, %cst_52 [0] : vector<2x128xf32> to vector<128xf32>
    %65 = vector.shape_cast %64 : vector<128xf32> to vector<1x128xf32>
    %c0_53 = arith.constant 0 : index
    %c1_54 = arith.constant 1 : index
    %c0_55 = arith.constant 0 : index
    %66 = vector.load %arg4[%c0_53, %c1_54, %c0_55] : memref<1x16x128xf32, #tpu.memory_space<vmem>>, vector<1x1x128xf32>
    %67 = vector.shape_cast %66 : vector<1x1x128xf32> to vector<1x128xf32>
    %68 = arith.addf %67, %60 : vector<1x128xf32>
    %c0_56 = arith.constant 0 : index
    %c1_57 = arith.constant 1 : index
    %c0_58 = arith.constant 0 : index
    %69 = vector.load %arg4[%c0_56, %c1_57, %c0_58] : memref<1x16x128xf32, #tpu.memory_space<vmem>>, vector<1x1x128xf32>
    %70 = vector.shape_cast %69 : vector<1x1x128xf32> to vector<1x128xf32>
    %71 = vector.shape_cast %68 : vector<1x128xf32> to vector<1x1x128xf32>
    tpu.vector_store %arg4[%c0_56, %c1_57, %c0_58], %71 {strides = array<i32>} : memref<1x16x128xf32, #tpu.memory_space<vmem>>, vector<1x1x128xf32>,
    %c0_59 = arith.constant 0 : index
    %c4 = arith.constant 4 : index
    %c0_60 = arith.constant 0 : index
    %72 = vector.load %arg4[%c0_59, %c4, %c0_60] : memref<1x16x128xf32, #tpu.memory_space<vmem>>, vector<1x1x128xf32>
    %73 = vector.shape_cast %72 : vector<1x1x128xf32> to vector<1x128xf32>
    %74 = arith.addf %73, %62 : vector<1x128xf32>
    %c0_61 = arith.constant 0 : index
    %c4_62 = arith.constant 4 : index
    %c0_63 = arith.constant 0 : index
    %75 = vector.load %arg4[%c0_61, %c4_62, %c0_63] : memref<1x16x128xf32, #tpu.memory_space<vmem>>, vector<1x1x128xf32>
    %76 = vector.shape_cast %75 : vector<1x1x128xf32> to vector<1x128xf32>
    %77 = vector.shape_cast %74 : vector<1x128xf32> to vector<1x1x128xf32>
    tpu.vector_store %arg4[%c0_61, %c4_62, %c0_63], %77 {strides = array<i32>} : memref<1x16x128xf32, #tpu.memory_space<vmem>>, vector<1x1x128xf32>,
    %c0_64 = arith.constant 0 : index
    %c7 = arith.constant 7 : index
    %c0_65 = arith.constant 0 : index
    %78 = vector.load %arg4[%c0_64, %c7, %c0_65] : memref<1x16x128xf32, #tpu.memory_space<vmem>>, vector<1x1x128xf32>
    %79 = vector.shape_cast %78 : vector<1x1x128xf32> to vector<1x128xf32>
    %80 = arith.addf %79, %65 : vector<1x128xf32>
    %c0_66 = arith.constant 0 : index
    %c7_67 = arith.constant 7 : index
    %c0_68 = arith.constant 0 : index
    %81 = vector.load %arg4[%c0_66, %c7_67, %c0_68] : memref<1x16x128xf32, #tpu.memory_space<vmem>>, vector<1x1x128xf32>
    %82 = vector.shape_cast %81 : vector<1x1x128xf32> to vector<1x128xf32>
    %83 = vector.shape_cast %80 : vector<1x128xf32> to vector<1x1x128xf32>
    tpu.vector_store %arg4[%c0_66, %c7_67, %c0_68], %83 {strides = array<i32>} : memref<1x16x128xf32, #tpu.memory_space<vmem>>, vector<1x1x128xf32>,
    %84 = arith.mulf %31, %18 : vector<2x128xf32>
    %cst_69 = arith.constant dense<0.000000e+00> : vector<128xf32>
    %85 = vector.multi_reduction <add>, %84, %cst_69 [0] : vector<2x128xf32> to vector<128xf32>
    %86 = vector.shape_cast %85 : vector<128xf32> to vector<1x128xf32>
    %cst_70 = arith.constant dense<0.000000e+00> : vector<128xf32>
    %87 = vector.multi_reduction <add>, %31, %cst_70 [0] : vector<2x128xf32> to vector<128xf32>
    %88 = vector.shape_cast %87 : vector<128xf32> to vector<1x128xf32>
    %89 = arith.mulf %18, %12 : vector<2x128xf32>
    %cst_71 = arith.constant dense<0.000000e+00> : vector<128xf32>
    %90 = vector.multi_reduction <add>, %89, %cst_71 [0] : vector<2x128xf32> to vector<128xf32>
    %91 = vector.shape_cast %90 : vector<128xf32> to vector<1x128xf32>
    %c0_72 = arith.constant 0 : index
    %c2_73 = arith.constant 2 : index
    %c0_74 = arith.constant 0 : index
    %92 = vector.load %arg4[%c0_72, %c2_73, %c0_74] : memref<1x16x128xf32, #tpu.memory_space<vmem>>, vector<1x1x128xf32>
    %93 = vector.shape_cast %92 : vector<1x1x128xf32> to vector<1x128xf32>
    %94 = arith.addf %93, %86 : vector<1x128xf32>
    %c0_75 = arith.constant 0 : index
    %c2_76 = arith.constant 2 : index
    %c0_77 = arith.constant 0 : index
    %95 = vector.load %arg4[%c0_75, %c2_76, %c0_77] : memref<1x16x128xf32, #tpu.memory_space<vmem>>, vector<1x1x128xf32>
    %96 = vector.shape_cast %95 : vector<1x1x128xf32> to vector<1x128xf32>
    %97 = vector.shape_cast %94 : vector<1x128xf32> to vector<1x1x128xf32>
    tpu.vector_store %arg4[%c0_75, %c2_76, %c0_77], %97 {strides = array<i32>} : memref<1x16x128xf32, #tpu.memory_space<vmem>>, vector<1x1x128xf32>,
    %c0_78 = arith.constant 0 : index
    %c5 = arith.constant 5 : index
    %c0_79 = arith.constant 0 : index
    %98 = vector.load %arg4[%c0_78, %c5, %c0_79] : memref<1x16x128xf32, #tpu.memory_space<vmem>>, vector<1x1x128xf32>
    %99 = vector.shape_cast %98 : vector<1x1x128xf32> to vector<1x128xf32>
    %100 = arith.addf %99, %88 : vector<1x128xf32>
    %c0_80 = arith.constant 0 : index
    %c5_81 = arith.constant 5 : index
    %c0_82 = arith.constant 0 : index
    %101 = vector.load %arg4[%c0_80, %c5_81, %c0_82] : memref<1x16x128xf32, #tpu.memory_space<vmem>>, vector<1x1x128xf32>
    %102 = vector.shape_cast %101 : vector<1x1x128xf32> to vector<1x128xf32>
    %103 = vector.shape_cast %100 : vector<1x128xf32> to vector<1x1x128xf32>
    tpu.vector_store %arg4[%c0_80, %c5_81, %c0_82], %103 {strides = array<i32>} : memref<1x16x128xf32, #tpu.memory_space<vmem>>, vector<1x1x128xf32>,
    %c0_83 = arith.constant 0 : index
    %c8 = arith.constant 8 : index
    %c0_84 = arith.constant 0 : index
    %104 = vector.load %arg4[%c0_83, %c8, %c0_84] : memref<1x16x128xf32, #tpu.memory_space<vmem>>, vector<1x1x128xf32>
    %105 = vector.shape_cast %104 : vector<1x1x128xf32> to vector<1x128xf32>
    %106 = arith.addf %105, %91 : vector<1x128xf32>
    %c0_85 = arith.constant 0 : index
    %c8_86 = arith.constant 8 : index
    %c0_87 = arith.constant 0 : index
    %107 = vector.load %arg4[%c0_85, %c8_86, %c0_87] : memref<1x16x128xf32, #tpu.memory_space<vmem>>, vector<1x1x128xf32>
    %108 = vector.shape_cast %107 : vector<1x1x128xf32> to vector<1x128xf32>
    %109 = vector.shape_cast %106 : vector<1x128xf32> to vector<1x1x128xf32>
    tpu.vector_store %arg4[%c0_85, %c8_86, %c0_87], %109 {strides = array<i32>} : memref<1x16x128xf32, #tpu.memory_space<vmem>>, vector<1x1x128xf32>,
    return
  }
  func.func @transform_0(%arg0: i32, %arg1: i32) -> (i32, i32, i32, i32) {
    %c0_i32 = arith.constant 0 : i32
    %c0_i32_0 = arith.constant 0 : i32
    %c0_i32_1 = arith.constant 0 : i32
    return %arg0, %c0_i32, %arg1, %c0_i32_0 : i32, i32, i32, i32
  }
  func.func @transform_1(%arg0: i32, %arg1: i32) -> (i32, i32, i32, i32) {
    %c0_i32 = arith.constant 0 : i32
    %c0_i32_0 = arith.constant 0 : i32
    %c0_i32_1 = arith.constant 0 : i32
    return %arg0, %c0_i32, %arg1, %c0_i32_0 : i32, i32, i32, i32
  }
  func.func @transform_2(%arg0: i32, %arg1: i32) -> (i32, i32, i32) {
    %c0_i32 = arith.constant 0 : i32
    %c0_i32_0 = arith.constant 0 : i32
    %c0_i32_1 = arith.constant 0 : i32
    return %arg0, %c0_i32, %c0_i32_0 : i32, i32, i32
  }
}

</mosaic_0001>

<bundles_post_ra>
// kernel: iou_forward.1
= control target key start
LH: loop header
LB: loop body
LE: loop exit
PB: predicated region body
PF: predicated region fallthrough
CT: control target
= control target key end

     0   :  { %s498_s9 = smov 0   ;;  %s500_s10 = smov 0   ;;  %s568_s0 = inlined_call_operand.vmem [shape: f32[2,3,2,128], index: 0, kind: input, shape index: {}]   ;;  %s569_s1 = inlined_call_operand.vmem [shape: f32[2,4,2,128], index: 1, kind: input, shape index: {}]   ;;  %s570_s2 = inlined_call_operand.vmem [shape: f32[2,16,128], index: 2, kind: output, shape index: {}]  }
   0x1   :  { %s502_s11 = smov 0  }
   0x2 LB: > { %s24_s12 = sadd.s32 1, %s475_s10  ;;  %p415_p0 = scmp.ge.s32.totalorder %s479_s11, 1  ;;  %s479_s11 = sphi %s502_s11, %s12_s11   ;;  %s475_s10 = sphi %s500_s10, %s572_s10   ;;  %s471_s9 = sphi %s498_s9, %s571_s9  }
   0x3   : > { %p26_p1 = scmp.ge.s32.totalorder %s24_s12, 2  ;;  %p144_p2 = scmp.lt.s32.totalorder %s479_s11, 3 }
   0x5   : > { %s574_s12 = smov (%p26_p1, %s24_s12), 0  ;;  %p145_p3 = pnand %p415_p0, %p144_p2 }
   0x6   : > { %p177_p4 = scmp.lt.s32.totalorder (!%p145_p3), %s471_s9, 1  ;;  %v481_v0 = vmov (!%p145_p3), 0.0   ;;  %vm228_vm2 = vcmask (!%p145_p3), 1041408   ;;  %vm482_vm3 = vmmov (!%p145_p3), 1  }
   0x7   : > { %148 = sbr.rel (%p145_p3) target bundleno = 55 (0x37), region = 28 }
   0xe   : > { %s576_s9 = smov (!%p177_p4, %s471_s9), 1 }
   0xf   : > { %s429_s13 = sshll.u32 %s576_s9, 4  ;;  %s430_s14 = smul.u32 6, %s576_s9 }
  0x10   : > { %s519_s17 = scalar_lea.vmem %s570_s2, %s429_s13  ;;  %s428_s18 = sshll.u32 %s576_s9, 3 }
  0x11   : > { %202 = vst [vmem:[%s519_s17] sm:$0xff] %v481_v0  ;;  %203 = vst [vmem:[%s519_s17 + $0x8] sm:$0xff] %v481_v0  ;;  %s184_s21 = scalar_lea.vmem %s568_s0, %s430_s14  ;;  %s192_s24 = scalar_lea.vmem %s569_s1, %s428_s18 }
  0x12   : > { %v204_v1 = vld [vmem:[%s184_s21] sm:$0x3]  ;;  %v421_v2 = vld [vmem:[%s184_s21 + $0x2] sm:$0x3]  ;;  %v422_v3 = vld [vmem:[%s184_s21 + $0x4] sm:$0x3] }
  0x13   : > { %v209_v4 = vld [vmem:[%s192_s24] sm:$0x3]  ;;  %v423_v5 = vld [vmem:[%s192_s24 + $0x2] sm:$0x3]  ;;  %v217_v6 = vmax.f32 %v204_v1, %v421_v2  ;;  %v424_v7 = vld [vmem:[%s192_s24 + $0x4] sm:$0x3]  ;;  %vm219_vm0 = vcmp.gt.f32.partialorder %v421_v2, %v204_v1 }
  0x14   : > { %v210_v8 = vsub.f32 1.0, %v209_v4  ;;  %v425_v9 = vld [vmem:[%s192_s24 + $0x6] sm:$0x3] }
  0x15   : > { %vm218_vm1 = vcmp.gt.f32.partialorder %v422_v3, %v217_v6 }
  0x16   : > { %vm220_vm4 = vmxor %vm218_vm1, %vm482_vm3  ;;  %v243_v10 = vmul.f32 %v423_v5, %v210_v8  ;;  %v275_v11 = vmul.f32 %v424_v7, %v210_v8  ;;  %v226_v12 = vsel %vm218_vm1, %v210_v8, 0.0  ;;  %v530_v16 = vmul.f32 %v425_v9, %v210_v8 }
  0x17   : > { %vm221_vm5 = vmand %vm219_vm0, %vm220_vm4  ;;  %v292_v13 = vmul.f32 %v425_v9, %v226_v12  ;;  %v300_v20 = vsel %vm228_vm2, %v226_v12, 0.0 }
  0x18   : > { %vm222_vm6 = vmor %vm221_vm5, %vm218_vm1  ;;  %v244_v14 = vsel %vm228_vm2, %v243_v10, 0.0  ;;  %v225_v15 = vsel %vm221_vm5, %v210_v8, 0.0  ;;  %v276_v23 = vsel %vm228_vm2, %v275_v11, 0.0  ;;  %v301_v36 = vrot.slane %v300_v20, 4  ;;  %v257_v55 = vld [vmem:[%s519_s17 + $0x6] sm:$0x1] }
  0x19   : > { %vm223_vm7 = vmxor %vm222_vm6, %vm482_vm3  ;;  %v245_v17 = vrot.slane %v244_v14, 4  ;;  %v260_v18 = vmul.f32 %v424_v7, %v225_v15  ;;  %v268_v19 = vsel %vm228_vm2, %v225_v15, 0.0  ;;  %v293_v24 = vsel %vm228_vm2, %v292_v13, 0.0  ;;  %v286_v59 = vld [vmem:[%s519_s17 + $0x4] sm:$0x1] }
  0x1a   : > { %v224_v21 = vsel %vm223_vm7, %v210_v8, 0.0  ;;  %v269_v22 = vrot.slane %v268_v19, 4  ;;  %v277_v32 = vrot.slane %v276_v23, 4  ;;  %v294_v35 = vrot.slane %v293_v24, 4  ;;  %v254_v1 = vld [vmem:[%s519_s17 + $0x3] sm:$0x1] }
  0x1b   : > { %v227_v25 = vmul.f32 %v423_v5, %v224_v21  ;;  %v236_v26 = vsel %vm228_vm2, %v224_v21, 0.0  ;;  %v246_v27 = vadd.f32 %v245_v17, %v244_v14  ;;  %v261_v28 = vsel %vm228_vm2, %v260_v18, 0.0  ;;  %v283_v3 = vld [vmem:[%s519_s17 + $0x1] sm:$0x1]  ;;  %v289_v7 = vld [vmem:[%s519_s17 + $0x7] sm:$0x1] }
  0x1c   : > { %v237_v29 = vrot.slane %v236_v26, 4  ;;  %v262_v30 = vrot.slane %v261_v28, 4  ;;  %v270_v31 = vadd.f32 %v269_v22, %v268_v19  ;;  %v278_v42 = vadd.f32 %v277_v32, %v276_v23  ;;  %v315_v14 = vld [vmem:[%s519_s17 + $0x2] sm:$0x1]  ;;  %v318_v15 = vld [vmem:[%s519_s17 + $0x5] sm:$0x1] }
  0x1d   : > { %v229_v33 = vsel %vm228_vm2, %v227_v25, 0.0  ;;  %v247_v34 = vrot.slane %v246_v27, 2  ;;  %v295_v43 = vadd.f32 %v294_v35, %v293_v24  ;;  %v302_v44 = vadd.f32 %v301_v36, %v300_v20  ;;  %v251_v17 = vld [vmem:[%s519_s17] sm:$0x1] }
  0x1e   : > { %v230_v37 = vrot.slane %v229_v33, 4  ;;  %v238_v38 = vadd.f32 %v237_v29, %v236_v26  ;;  %v263_v39 = vadd.f32 %v262_v30, %v261_v28  ;;  %v271_v40 = vrot.slane %v270_v31, 2 }
  0x1f   : > { %v248_v41 = vadd.f32 %v247_v34, %v246_v27  ;;  %v279_v50 = vrot.slane %v278_v42, 2  ;;  %v296_v51 = vrot.slane %v295_v43, 2  ;;  %v303_v52 = vrot.slane %v302_v44, 2 }
  0x20   : > { %v231_v45 = vadd.f32 %v230_v37, %v229_v33  ;;  %v239_v46 = vrot.slane %v238_v38, 2  ;;  %v264_v47 = vrot.slane %v263_v39, 2  ;;  %v272_v48 = vadd.f32 %v271_v40, %v270_v31  ;;  %v321_v33 = vld [vmem:[%s519_s17 + $0x8] sm:$0x1] }
  0x21   : > { %v249_v49 = vrot.slane %v248_v41, 1  ;;  %v280_v60 = vadd.f32 %v279_v50, %v278_v42  ;;  %v297_v61 = vadd.f32 %v296_v51, %v295_v43  ;;  %v304_v62 = vadd.f32 %v303_v52, %v302_v44 }
  0x22   : > { %v232_v53 = vrot.slane %v231_v45, 2  ;;  %v240_v54 = vadd.f32 %v239_v46, %v238_v38  ;;  %v265_v56 = vadd.f32 %v264_v47, %v263_v39  ;;  %v273_v57 = vrot.slane %v272_v48, 1 }
  0x23   : > { %v250_v58 = vadd.f32 %v249_v49, %v248_v41  ;;  %v281_v6 = vrot.slane %v280_v60, 1  ;;  %v298_v8 = vrot.slane %v297_v61, 1  ;;  %v305_v9 = vrot.slane %v304_v62, 1 }
  0x24   : > { %v233_v63 = vadd.f32 %v232_v53, %v231_v45  ;;  %v241_v0 = vrot.slane %v240_v54, 1  ;;  %v266_v2 = vrot.slane %v265_v56, 1  ;;  %v274_v4 = vadd.f32 %v273_v57, %v272_v48 }
  0x25   : > { %v258_v5 = vadd.f32 %v257_v55, %v250_v58  ;;  %v282_v18 = vadd.f32 %v281_v6, %v280_v60  ;;  %v299_v19 = vadd.f32 %v298_v8, %v297_v61  ;;  %v306_v20 = vadd.f32 %v305_v9, %v304_v62 }
  0x26   : > { %v234_v10 = vrot.slane %v233_v63, 1  ;;  %v242_v11 = vadd.f32 %v241_v0, %v240_v54  ;;  %v267_v12 = vadd.f32 %v266_v2, %v265_v56  ;;  %v287_v13 = vadd.f32 %v286_v59, %v274_v4 }
  0x27   : > { %259 = vst [vmem:[%s519_s17 + $0x6] sm:$0x1] %v258_v5  ;;  %v308_v21 = vsel %vm228_vm2, %v530_v16, 0.0  ;;  %v290_v26 = vadd.f32 %v289_v7, %v282_v18  ;;  %v316_v27 = vadd.f32 %v315_v14, %v299_v19  ;;  %v319_v28 = vadd.f32 %v318_v15, %v306_v20 }
  0x28   : > { %v235_v22 = vadd.f32 %v234_v10, %v233_v63  ;;  %v255_v23 = vadd.f32 %v254_v1, %v242_v11  ;;  %v284_v24 = vadd.f32 %v283_v3, %v267_v12  ;;  %288 = vst [vmem:[%s519_s17 + $0x4] sm:$0x1] %v287_v13  ;;  %v309_v25 = vrot.slane %v308_v21, 4 }
  0x29   : > { %291 = vst [vmem:[%s519_s17 + $0x7] sm:$0x1] %v290_v26  ;;  %317 = vst [vmem:[%s519_s17 + $0x2] sm:$0x1] %v316_v27 }
  0x2a   : > { %v252_v29 = vadd.f32 %v251_v17, %v235_v22  ;;  %256 = vst [vmem:[%s519_s17 + $0x3] sm:$0x1] %v255_v23  ;;  %285 = vst [vmem:[%s519_s17 + $0x1] sm:$0x1] %v284_v24  ;;  %v310_v30 = vadd.f32 %v309_v25, %v308_v21 }
  0x2b   : > { %320 = vst [vmem:[%s519_s17 + $0x5] sm:$0x1] %v319_v28 }
  0x2c   : > { %253 = vst [vmem:[%s519_s17] sm:$0x1] %v252_v29  ;;  %v311_v16 = vrot.slane %v310_v30, 2 }
  0x2e   : > { %v312_v31 = vadd.f32 %v311_v16, %v310_v30 }
  0x30   : > { %v313_v32 = vrot.slane %v312_v31, 1 }
  0x32   : > { %v314_v34 = vadd.f32 %v313_v32, %v312_v31 }
  0x34   : > { %v322_v35 = vadd.f32 %v321_v33, %v314_v34 }
  0x36   : > { %323 = vst [vmem:[%s519_s17 + $0x8] sm:$0x1] %v322_v35 }
  0x37 PF: > { %s12_s11 = sadd.s32 1, %s479_s11   ;;  %s571_s9 = smov %s475_s10 }
  0x38   : > { %p9_p5 = scmp.ge.s32.totalorder %s12_s11, 4   ;;  %s572_s10 = smov %s574_s12 }
  0x3a   :  { %11 = sbr.rel (!%p9_p5) target bundleno = 2 (0x2), region = 70 }

</bundles_post_ra>
